<compile_context>
chip_gen: v7x
topology: tpu7x:2x2x1
jax: 0.10.0
libtpu: 0.0.40
codegen_flags: <defaults>
</compile_context>

<pallas_src>
import functools

import jax
import jax.numpy as jnp
from jax.experimental import pallas as pl
from jax.experimental.pallas import tpu as pltpu


LANES = 128        # batch sits on lanes -> pad batch to a lane multiple
MAX_TILE_B = 1024  # lane-tile size for the batch grid (sweep upward if needed)


def _round_up(x, m):
    return ((x + m - 1) // m) * m


def _layer_mode(n_in, n_out):
    if n_in == 1:
        return "bcast"   # first layer: outer product on the VPU
    if n_out == 1:
        return "reduce"  # last layer: elementwise mul + sublane reduce
    return "mxu"         # genuine matmul -> MXU, batch fills MXU columns


# ---------------------------------------------------------------------------
# Fused Pallas kernel: entire MFVI_Net forward, batch-on-lanes.
#   refs = (x_t, [wpack, bpack] * n_layers, out)
#   x_t  : (1, tile_b)                          activation h is (n_feat, tile_b)
#   wpack: (3, n_out, n_in) [mxu/bcast]  or  (3, n_in, 1) [reduce]
#   bpack: (3, n_out, 1)
# ---------------------------------------------------------------------------
def _mfvi_net_kernel(*refs, layer_modes):
    x_ref = refs[0]
    out_ref = refs[-1]
    param_refs = refs[1:-1]  # 2 packed refs per layer

    n_layers = len(layer_modes)
    h = x_ref[...]                                     # (1, tile_b)
    for i, mode in enumerate(layer_modes):
        wpack = param_refs[2 * i]                      # stacked mean/logvar/z
        bpack = param_refs[2 * i + 1]                  # (3, n_out, 1)
        # Reparameterization trick: W = mean + exp(0.5*logvar) * z
        # (exp lands on the EUP slot -> effectively free; keep in-kernel).
        w = wpack[0] + jnp.exp(0.5 * wpack[1]) * wpack[2]
        b = bpack[0] + jnp.exp(0.5 * bpack[1]) * bpack[2]   # (n_out, 1)

        if mode == "bcast":
            # n_in == 1: (n_out, 1) * (1, B) outer product; VPU only.
            y = w * h + b
        elif mode == "reduce":
            # n_out == 1: w kept as (n_in, 1); mul + sublane reduce -> (1, B).
            y = jnp.sum(w * h, axis=0, keepdims=True) + b
        else:
            # w is W^T (n_out, n_in); batch on MXU columns, f32 accumulation.
            # TODO(synk): for hidden sizes >=256 on v6e/v7x, cast w/h to bf16
            # here (keep preferred_element_type=f32) for ~2x MXU throughput.
            y = jnp.dot(w, h, preferred_element_type=jnp.float32) + b

        if i < n_layers - 1:
            y = jnp.maximum(y, 0.0)                    # ReLU (all but last)
        h = y

    out_ref[...] = h                                   # lane-dense store


# ---------------------------------------------------------------------------
# Noise: one jax.random.normal per forward, sliced per layer (shared with ref)
# ---------------------------------------------------------------------------
def _draw_noise(noise_key, layer_dims):
    sizes = []
    for n_in, n_out in layer_dims:
        sizes += [n_in * n_out, n_out]
    flat = jax.random.normal(noise_key, (sum(sizes),), jnp.float32)
    zs, off = [], 0
    for n_in, n_out in layer_dims:
        z_w = flat[off: off + n_in * n_out].reshape(n_in, n_out)
        off += n_in * n_out
        z_b = flat[off: off + n_out]
        off += n_out
        zs.append((z_w, z_b))
    return zs


# ---------------------------------------------------------------------------
# Parameter construction (mirrors MFVI_Linear_Layer.__init__, deterministic)
# ---------------------------------------------------------------------------
def init_mfvi_net_params(key, hidden_sizes, input_size=1, output_size=1):
    sizes = [input_size] + list(hidden_sizes) + [output_size]
    params = []
    for n_in, n_out in zip(sizes[:-1], sizes[1:]):
        key, k0, k1, k2, k3 = jax.random.split(key, 5)
        params.append(dict(
            W_mean=jax.random.normal(k0, (n_in, n_out), jnp.float32),
            W_logvar=jax.random.normal(k1, (n_in, n_out), jnp.float32) - 3.0,
            b_mean=jax.random.normal(k2, (n_out,), jnp.float32),
            b_logvar=jax.random.normal(k3, (n_out,), jnp.float32) - 3.0,
        ))
    return params


# ---------------------------------------------------------------------------
# MFVI_Net forward: single fused pallas_call, parallel batch grid
# ---------------------------------------------------------------------------
def mfvi_net_forward(params, s, no_samples, noise_key, input_size=1):
    s = s.reshape(-1, input_size)            # s.view(-1, self.input_size)
    batch = s.shape[0]
    layer_dims = tuple((p["W_mean"].shape[0], p["W_mean"].shape[1])
                       for p in params)
    n_out_last = layer_dims[-1][1]
    zs = _draw_noise(noise_key, layer_dims)

    # Batch on lanes: pad to a lane multiple, pick a lane-tile for the grid.
    batch_padded = _round_up(batch, LANES)
    if batch_padded > MAX_TILE_B:
        tile_b = MAX_TILE_B
        batch_padded = _round_up(batch_padded, tile_b)
    else:
        tile_b = batch_padded
    grid = (batch_padded // tile_b,)

    # Transposed, zero-padded input: (input_size, batch_padded), lane-dense.
    x_t = jnp.pad(s.T.astype(jnp.float32),
                  ((0, 0), (0, batch_padded - batch)))

    kernel_inputs = [x_t]
    in_specs = [pl.BlockSpec((input_size, tile_b), lambda i: (0, i))]
    layer_modes = []
    for p, (n_in, n_out), (z_w, z_b) in zip(params, layer_dims, zs):
        mode = _layer_mode(n_in, n_out)
        layer_modes.append(mode)
        if mode == "reduce":
            # Keep original (n_in, 1) orientation so it broadcasts against h.
            wm, wlv, zw = p["W_mean"], p["W_logvar"], z_w
        else:
            # Pre-transpose so the kernel never transposes: W^T (n_out, n_in).
            wm, wlv, zw = p["W_mean"].T, p["W_logvar"].T, z_w.T
        wpack = jnp.stack([wm, wlv, zw], axis=0)
        bpack = jnp.stack([p["b_mean"].reshape(n_out, 1),
                           p["b_logvar"].reshape(n_out, 1),
                           z_b.reshape(n_out, 1)], axis=0)
        kernel_inputs += [wpack, bpack]
        # Constant block index -> weight packs stay resident across batch tiles.
        in_specs.append(pl.BlockSpec(wpack.shape, lambda i: (0, 0, 0)))
        in_specs.append(pl.BlockSpec(bpack.shape, lambda i: (0, 0, 0)))

    kernel = functools.partial(_mfvi_net_kernel,
                               layer_modes=tuple(layer_modes))

    out = pl.pallas_call(
        kernel,
        out_shape=jax.ShapeDtypeStruct((n_out_last, batch_padded), jnp.float32),
        grid=grid,
        in_specs=in_specs,
        out_specs=pl.BlockSpec((n_out_last, tile_b), lambda i: (0, i)),
        compiler_params=pltpu.CompilerParams(
            dimension_semantics=("parallel",)),
    )(*kernel_inputs)

    out = out[:, :batch]                     # drop lane padding
    # (n_out_last, batch) -> (batch, n_out_last) -> s.view(no_samples, -1)
    return out.T.reshape(no_samples, -1)


# ---------------------------------------------------------------------------
# Pure-JAX reference (identical noise draws) for correctness check
# ---------------------------------------------------------------------------
def mfvi_net_reference(params, s, no_samples, noise_key, input_size=1):
    s = s.reshape(-1, input_size)
    layer_dims = tuple((p["W_mean"].shape[0], p["W_mean"].shape[1])
                       for p in params)
    zs = _draw_noise(noise_key, layer_dims)
    n_layers = len(params)
    for i, (p, (z_w, z_b)) in enumerate(zip(params, zs)):
        w = p["W_mean"] + jnp.exp(0.5 * p["W_logvar"]) * z_w
        b = p["b_mean"] + jnp.exp(0.5 * p["b_logvar"]) * z_b
        s = s @ w + b[None, :]
        if i < n_layers - 1:
            s = jnp.maximum(s, 0.0)
    return s.reshape(no_samples, -1)


if __name__ == "__main__":
    key = jax.random.PRNGKey(0)
    k_params, k_input, k_noise = jax.random.split(key, 3)

    hidden_sizes = [32, 32]
    no_samples = 2
    batch = 16  # rows after s.view(-1, 1); reshaped to (2, 8) at the end

    params = init_mfvi_net_params(k_params, hidden_sizes)
    s_in = jax.random.normal(k_input, (batch, 1), jnp.float32)

    out = mfvi_net_forward(params, s_in, no_samples, k_noise)
    out = jax.block_until_ready(out)

    ref = mfvi_net_reference(params, s_in, no_samples, k_noise)
    assert out.shape == (no_samples, batch // no_samples), out.shape
    assert jnp.allclose(out, ref, atol=1e-5, rtol=1e-5), (out, ref)

    print("KERNEL_OK")
</pallas_src>

<mosaic_0001>
module attributes {stable_mosaic.version = 11 : i64} {
  func.func @_mfvi_net_kernel(%arg0: i32, %arg1: memref<1x128xf32, #tpu.memory_space<vmem>>, %arg2: memref<3x32x1xf32, #tpu.memory_space<vmem>>, %arg3: memref<3x32x1xf32, #tpu.memory_space<vmem>>, %arg4: memref<3x32x32xf32, #tpu.memory_space<vmem>>, %arg5: memref<3x32x1xf32, #tpu.memory_space<vmem>>, %arg6: memref<3x32x1xf32, #tpu.memory_space<vmem>>, %arg7: memref<3x1x1xf32, #tpu.memory_space<vmem>>, %arg8: memref<1x128xf32, #tpu.memory_space<vmem>>) attributes {dimension_semantics = [#tpu.dimension_semantics<parallel>], iteration_bounds = array<i64: 1>, scalar_prefetch = 0 : i64, scratch_operands = 0 : i64, tpu.core_type = #tpu.core_type<tc>, window_params = [{transform_indices = @transform_0, window_bounds = array<i64: 1, 128>}, {pipeline_mode = #tpu.pipeline_mode<synchronous>, transform_indices = @transform_1, window_bounds = array<i64: 3, 32, 1>}, {pipeline_mode = #tpu.pipeline_mode<synchronous>, transform_indices = @transform_2, window_bounds = array<i64: 3, 32, 1>}, {pipeline_mode = #tpu.pipeline_mode<synchronous>, transform_indices = @transform_3, window_bounds = array<i64: 3, 32, 32>}, {pipeline_mode = #tpu.pipeline_mode<synchronous>, transform_indices = @transform_4, window_bounds = array<i64: 3, 32, 1>}, {pipeline_mode = #tpu.pipeline_mode<synchronous>, transform_indices = @transform_5, window_bounds = array<i64: 3, 32, 1>}, {pipeline_mode = #tpu.pipeline_mode<synchronous>, transform_indices = @transform_6, window_bounds = array<i64: 3, 1, 1>}, {transform_indices = @transform_7, window_bounds = array<i64: 1, 128>}]} {
    %c0 = arith.constant 0 : index
    %c0_0 = arith.constant 0 : index
    %0 = vector.load %arg1[%c0, %c0_0] : memref<1x128xf32, #tpu.memory_space<vmem>>, vector<1x128xf32>
    %c0_1 = arith.constant 0 : index
    %c0_2 = arith.constant 0 : index
    %c0_3 = arith.constant 0 : index
    %1 = vector.load %arg2[%c0_1, %c0_2, %c0_3] : memref<3x32x1xf32, #tpu.memory_space<vmem>>, vector<1x32x1xf32>
    %2 = vector.shape_cast %1 : vector<1x32x1xf32> to vector<32x1xf32>
    %c1 = arith.constant 1 : index
    %c0_4 = arith.constant 0 : index
    %c0_5 = arith.constant 0 : index
    %3 = vector.load %arg2[%c1, %c0_4, %c0_5] : memref<3x32x1xf32, #tpu.memory_space<vmem>>, vector<1x32x1xf32>
    %4 = vector.shape_cast %3 : vector<1x32x1xf32> to vector<32x1xf32>
    %cst = arith.constant 5.000000e-01 : f32
    %5 = vector.broadcast %cst : f32 to vector<32x1xf32>
    %6 = arith.mulf %5, %4 : vector<32x1xf32>
    %7 = math.exp %6 : vector<32x1xf32>
    %c2 = arith.constant 2 : index
    %c0_6 = arith.constant 0 : index
    %c0_7 = arith.constant 0 : index
    %8 = vector.load %arg2[%c2, %c0_6, %c0_7] : memref<3x32x1xf32, #tpu.memory_space<vmem>>, vector<1x32x1xf32>
    %9 = vector.shape_cast %8 : vector<1x32x1xf32> to vector<32x1xf32>
    %10 = arith.mulf %7, %9 : vector<32x1xf32>
    %11 = arith.addf %2, %10 : vector<32x1xf32>
    %c0_8 = arith.constant 0 : index
    %c0_9 = arith.constant 0 : index
    %c0_10 = arith.constant 0 : index
    %12 = vector.load %arg3[%c0_8, %c0_9, %c0_10] : memref<3x32x1xf32, #tpu.memory_space<vmem>>, vector<1x32x1xf32>
    %13 = vector.shape_cast %12 : vector<1x32x1xf32> to vector<32x1xf32>
    %c1_11 = arith.constant 1 : index
    %c0_12 = arith.constant 0 : index
    %c0_13 = arith.constant 0 : index
    %14 = vector.load %arg3[%c1_11, %c0_12, %c0_13] : memref<3x32x1xf32, #tpu.memory_space<vmem>>, vector<1x32x1xf32>
    %15 = vector.shape_cast %14 : vector<1x32x1xf32> to vector<32x1xf32>
    %cst_14 = arith.constant 5.000000e-01 : f32
    %16 = vector.broadcast %cst_14 : f32 to vector<32x1xf32>
    %17 = arith.mulf %16, %15 : vector<32x1xf32>
    %18 = math.exp %17 : vector<32x1xf32>
    %c2_15 = arith.constant 2 : index
    %c0_16 = arith.constant 0 : index
    %c0_17 = arith.constant 0 : index
    %19 = vector.load %arg3[%c2_15, %c0_16, %c0_17] : memref<3x32x1xf32, #tpu.memory_space<vmem>>, vector<1x32x1xf32>
    %20 = vector.shape_cast %19 : vector<1x32x1xf32> to vector<32x1xf32>
    %21 = arith.mulf %18, %20 : vector<32x1xf32>
    %22 = arith.addf %13, %21 : vector<32x1xf32>
    %23 = vector.broadcast %11 : vector<32x1xf32> to vector<32x128xf32>
    %24 = vector.broadcast %0 : vector<1x128xf32> to vector<32x128xf32>
    %25 = arith.mulf %23, %24 : vector<32x128xf32>
    %26 = vector.broadcast %22 : vector<32x1xf32> to vector<32x128xf32>
    %27 = arith.addf %25, %26 : vector<32x128xf32>
    %cst_18 = arith.constant 0.000000e+00 : f32
    %28 = vector.broadcast %cst_18 : f32 to vector<32x128xf32>
    %29 = arith.maximumf %27, %28 : vector<32x128xf32>
    %c0_19 = arith.constant 0 : index
    %c0_20 = arith.constant 0 : index
    %c0_21 = arith.constant 0 : index
    %30 = vector.load %arg4[%c0_19, %c0_20, %c0_21] : memref<3x32x32xf32, #tpu.memory_space<vmem>>, vector<1x32x32xf32>
    %31 = vector.shape_cast %30 : vector<1x32x32xf32> to vector<32x32xf32>
    %c1_22 = arith.constant 1 : index
    %c0_23 = arith.constant 0 : index
    %c0_24 = arith.constant 0 : index
    %32 = vector.load %arg4[%c1_22, %c0_23, %c0_24] : memref<3x32x32xf32, #tpu.memory_space<vmem>>, vector<1x32x32xf32>
    %33 = vector.shape_cast %32 : vector<1x32x32xf32> to vector<32x32xf32>
    %cst_25 = arith.constant 5.000000e-01 : f32
    %34 = vector.broadcast %cst_25 : f32 to vector<32x32xf32>
    %35 = arith.mulf %34, %33 : vector<32x32xf32>
    %36 = math.exp %35 : vector<32x32xf32>
    %c2_26 = arith.constant 2 : index
    %c0_27 = arith.constant 0 : index
    %c0_28 = arith.constant 0 : index
    %37 = vector.load %arg4[%c2_26, %c0_27, %c0_28] : memref<3x32x32xf32, #tpu.memory_space<vmem>>, vector<1x32x32xf32>
    %38 = vector.shape_cast %37 : vector<1x32x32xf32> to vector<32x32xf32>
    %39 = arith.mulf %36, %38 : vector<32x32xf32>
    %40 = arith.addf %31, %39 : vector<32x32xf32>
    %c0_29 = arith.constant 0 : index
    %c0_30 = arith.constant 0 : index
    %c0_31 = arith.constant 0 : index
    %41 = vector.load %arg5[%c0_29, %c0_30, %c0_31] : memref<3x32x1xf32, #tpu.memory_space<vmem>>, vector<1x32x1xf32>
    %42 = vector.shape_cast %41 : vector<1x32x1xf32> to vector<32x1xf32>
    %c1_32 = arith.constant 1 : index
    %c0_33 = arith.constant 0 : index
    %c0_34 = arith.constant 0 : index
    %43 = vector.load %arg5[%c1_32, %c0_33, %c0_34] : memref<3x32x1xf32, #tpu.memory_space<vmem>>, vector<1x32x1xf32>
    %44 = vector.shape_cast %43 : vector<1x32x1xf32> to vector<32x1xf32>
    %cst_35 = arith.constant 5.000000e-01 : f32
    %45 = vector.broadcast %cst_35 : f32 to vector<32x1xf32>
    %46 = arith.mulf %45, %44 : vector<32x1xf32>
    %47 = math.exp %46 : vector<32x1xf32>
    %c2_36 = arith.constant 2 : index
    %c0_37 = arith.constant 0 : index
    %c0_38 = arith.constant 0 : index
    %48 = vector.load %arg5[%c2_36, %c0_37, %c0_38] : memref<3x32x1xf32, #tpu.memory_space<vmem>>, vector<1x32x1xf32>
    %49 = vector.shape_cast %48 : vector<1x32x1xf32> to vector<32x1xf32>
    %50 = arith.mulf %47, %49 : vector<32x1xf32>
    %51 = arith.addf %42, %50 : vector<32x1xf32>
    %cst_39 = arith.constant dense<0.000000e+00> : vector<32x128xf32>
    %52 = tpu.matmul %40, %29, %cst_39 {dimension_numbers = #tpu.dot_dimension_numbers<[1], [0], [0], [1], [0, 0, 1, 1], [], []>} : vector<32x32xf32>, vector<32x128xf32>, vector<32x128xf32> -> vector<32x128xf32>
    %53 = vector.broadcast %51 : vector<32x1xf32> to vector<32x128xf32>
    %54 = arith.addf %52, %53 : vector<32x128xf32>
    %cst_40 = arith.constant 0.000000e+00 : f32
    %55 = vector.broadcast %cst_40 : f32 to vector<32x128xf32>
    %56 = arith.maximumf %54, %55 : vector<32x128xf32>
    %c0_41 = arith.constant 0 : index
    %c0_42 = arith.constant 0 : index
    %c0_43 = arith.constant 0 : index
    %57 = vector.load %arg6[%c0_41, %c0_42, %c0_43] : memref<3x32x1xf32, #tpu.memory_space<vmem>>, vector<1x32x1xf32>
    %58 = vector.shape_cast %57 : vector<1x32x1xf32> to vector<32x1xf32>
    %c1_44 = arith.constant 1 : index
    %c0_45 = arith.constant 0 : index
    %c0_46 = arith.constant 0 : index
    %59 = vector.load %arg6[%c1_44, %c0_45, %c0_46] : memref<3x32x1xf32, #tpu.memory_space<vmem>>, vector<1x32x1xf32>
    %60 = vector.shape_cast %59 : vector<1x32x1xf32> to vector<32x1xf32>
    %cst_47 = arith.constant 5.000000e-01 : f32
    %61 = vector.broadcast %cst_47 : f32 to vector<32x1xf32>
    %62 = arith.mulf %61, %60 : vector<32x1xf32>
    %63 = math.exp %62 : vector<32x1xf32>
    %c2_48 = arith.constant 2 : index
    %c0_49 = arith.constant 0 : index
    %c0_50 = arith.constant 0 : index
    %64 = vector.load %arg6[%c2_48, %c0_49, %c0_50] : memref<3x32x1xf32, #tpu.memory_space<vmem>>, vector<1x32x1xf32>
    %65 = vector.shape_cast %64 : vector<1x32x1xf32> to vector<32x1xf32>
    %66 = arith.mulf %63, %65 : vector<32x1xf32>
    %67 = arith.addf %58, %66 : vector<32x1xf32>
    %c0_51 = arith.constant 0 : index
    %c0_52 = arith.constant 0 : index
    %c0_53 = arith.constant 0 : index
    %68 = vector.load %arg7[%c0_51, %c0_52, %c0_53] : memref<3x1x1xf32, #tpu.memory_space<vmem>>, vector<1x1x1xf32>
    %69 = vector.shape_cast %68 : vector<1x1x1xf32> to vector<1x1xf32>
    %c1_54 = arith.constant 1 : index
    %c0_55 = arith.constant 0 : index
    %c0_56 = arith.constant 0 : index
    %70 = vector.load %arg7[%c1_54, %c0_55, %c0_56] : memref<3x1x1xf32, #tpu.memory_space<vmem>>, vector<1x1x1xf32>
    %71 = vector.shape_cast %70 : vector<1x1x1xf32> to vector<1x1xf32>
    %cst_57 = arith.constant 5.000000e-01 : f32
    %72 = vector.broadcast %cst_57 : f32 to vector<1x1xf32>
    %73 = arith.mulf %72, %71 : vector<1x1xf32>
    %74 = math.exp %73 : vector<1x1xf32>
    %c2_58 = arith.constant 2 : index
    %c0_59 = arith.constant 0 : index
    %c0_60 = arith.constant 0 : index
    %75 = vector.load %arg7[%c2_58, %c0_59, %c0_60] : memref<3x1x1xf32, #tpu.memory_space<vmem>>, vector<1x1x1xf32>
    %76 = vector.shape_cast %75 : vector<1x1x1xf32> to vector<1x1xf32>
    %77 = arith.mulf %74, %76 : vector<1x1xf32>
    %78 = arith.addf %69, %77 : vector<1x1xf32>
    %79 = vector.broadcast %67 : vector<32x1xf32> to vector<32x128xf32>
    %80 = arith.mulf %79, %56 : vector<32x128xf32>
    %cst_61 = arith.constant dense<0.000000e+00> : vector<128xf32>
    %81 = vector.multi_reduction <add>, %80, %cst_61 [0] : vector<32x128xf32> to vector<128xf32>
    %82 = vector.shape_cast %81 : vector<128xf32> to vector<1x128xf32>
    %83 = vector.broadcast %78 : vector<1x1xf32> to vector<1x128xf32>
    %84 = arith.addf %82, %83 : vector<1x128xf32>
    %c0_62 = arith.constant 0 : index
    %c0_63 = arith.constant 0 : index
    %85 = vector.load %arg8[%c0_62, %c0_63] : memref<1x128xf32, #tpu.memory_space<vmem>>, vector<1x128xf32>
    tpu.vector_store %arg8[%c0_62, %c0_63], %84 {strides = array<i32>} : memref<1x128xf32, #tpu.memory_space<vmem>>, vector<1x128xf32>,
    return
  }
  func.func @transform_0(%arg0: i32) -> (i32, i32) {
    %c0_i32 = arith.constant 0 : i32
    %c0_i32_0 = arith.constant 0 : i32
    return %c0_i32, %arg0 : i32, i32
  }
  func.func @transform_1(%arg0: i32) -> (i32, i32, i32) {
    %c0_i32 = arith.constant 0 : i32
    %c0_i32_0 = arith.constant 0 : i32
    %c0_i32_1 = arith.constant 0 : i32
    %c0_i32_2 = arith.constant 0 : i32
    return %c0_i32, %c0_i32_0, %c0_i32_1 : i32, i32, i32
  }
  func.func @transform_2(%arg0: i32) -> (i32, i32, i32) {
    %c0_i32 = arith.constant 0 : i32
    %c0_i32_0 = arith.constant 0 : i32
    %c0_i32_1 = arith.constant 0 : i32
    %c0_i32_2 = arith.constant 0 : i32
    return %c0_i32, %c0_i32_0, %c0_i32_1 : i32, i32, i32
  }
  func.func @transform_3(%arg0: i32) -> (i32, i32, i32) {
    %c0_i32 = arith.constant 0 : i32
    %c0_i32_0 = arith.constant 0 : i32
    %c0_i32_1 = arith.constant 0 : i32
    %c0_i32_2 = arith.constant 0 : i32
    return %c0_i32, %c0_i32_0, %c0_i32_1 : i32, i32, i32
  }
  func.func @transform_4(%arg0: i32) -> (i32, i32, i32) {
    %c0_i32 = arith.constant 0 : i32
    %c0_i32_0 = arith.constant 0 : i32
    %c0_i32_1 = arith.constant 0 : i32
    %c0_i32_2 = arith.constant 0 : i32
    return %c0_i32, %c0_i32_0, %c0_i32_1 : i32, i32, i32
  }
  func.func @transform_5(%arg0: i32) -> (i32, i32, i32) {
    %c0_i32 = arith.constant 0 : i32
    %c0_i32_0 = arith.constant 0 : i32
    %c0_i32_1 = arith.constant 0 : i32
    %c0_i32_2 = arith.constant 0 : i32
    return %c0_i32, %c0_i32_0, %c0_i32_1 : i32, i32, i32
  }
  func.func @transform_6(%arg0: i32) -> (i32, i32, i32) {
    %c0_i32 = arith.constant 0 : i32
    %c0_i32_0 = arith.constant 0 : i32
    %c0_i32_1 = arith.constant 0 : i32
    %c0_i32_2 = arith.constant 0 : i32
    return %c0_i32, %c0_i32_0, %c0_i32_1 : i32, i32, i32
  }
  func.func @transform_7(%arg0: i32) -> (i32, i32) {
    %c0_i32 = arith.constant 0 : i32
    %c0_i32_0 = arith.constant 0 : i32
    return %c0_i32, %arg0 : i32, i32
  }
}

</mosaic_0001>

<bundles_post_ra>
// kernel: tpu_custom_call.1
= control target key start
LH: loop header
LB: loop body
LE: loop exit
PB: predicated region body
PF: predicated region fallthrough
CT: control target
= control target key end

     0   :  { %v597_v1 = vmov 0   ;;  %s847_s0 = inlined_call_operand.vmem [shape: f32[1,128], index: 0, kind: input, shape index: {}]   ;;  %s848_s1 = inlined_call_operand.vmem [shape: f32[3,32,1], index: 1, kind: input, shape index: {}]   ;;  %s849_s2 = inlined_call_operand.vmem [shape: f32[3,32,1], index: 2, kind: input, shape index: {}]   ;;  %s850_s3 = inlined_call_operand.vmem [shape: f32[3,32,32], index: 3, kind: input, shape index: {}]   ;;  %s851_s4 = inlined_call_operand.vmem [shape: f32[3,32,1], index: 4, kind: input, shape index: {}]   ;;  %s852_s5 = inlined_call_operand.vmem [shape: f32[3,32,1], index: 5, kind: input, shape index: {}]   ;;  %s853_s6 = inlined_call_operand.vmem [shape: f32[3,1,1], index: 6, kind: input, shape index: {}]   ;;  %s854_s7 = inlined_call_operand.hbm [shape: f32[1,128], index: 7, kind: output, shape index: {}]  }
   0x1   :  { %v454_v0 = vld [vmem:[%s849_s2 + $0x20] sm:$0xff]  ;;  %530 = vset.pattern.permute.xlu1 %v597_v1  ;;  %529 = vset.pattern.permute.xlu0 %v597_v1  ;;  %v455_v5 = vld [vmem:[%s849_s2 + $0x28] sm:$0xff]  ;;  %v449_v11 = vld [vmem:[%s848_s1 + $0x38] sm:$0xff] }
   0x2   :  { %v71_v2 = vmul.f32 0.5, %v454_v0  ;;  %v446_v3 = vld [vmem:[%s848_s1 + $0x20] sm:$0xff]  ;;  %v72_v7 = vmul.f32 0.5, %v455_v5  ;;  %v447_v8 = vld [vmem:[%s848_s1 + $0x28] sm:$0xff]  ;;  %v40_v13 = vmul.f32 0.5, %v449_v11  ;;  %v448_v14 = vld [vmem:[%s848_s1 + $0x30] sm:$0xff] }
   0x3   :  { %v37_v4 = vmul.f32 0.5, %v446_v3  ;;  %v38_v10 = vmul.f32 0.5, %v447_v8  ;;  %v39_v16 = vmul.f32 0.5, %v448_v14  ;;  %v457_v17 = vld [vmem:[%s849_s2 + $0x38] sm:$0xff]  ;;  %v456_v20 = vld [vmem:[%s849_s2 + $0x30] sm:$0xff]  ;;  %v472_v23 = vld [vmem:[%s851_s4 + $0x28] sm:$0xff] }
   0x4   :  { %v75_v6 = vmul.f32 1.442695, %v71_v2  ;;  %v77_v12 = vmul.f32 1.442695, %v72_v7  ;;  %v47_v18 = vmul.f32 1.442695, %v40_v13 }
   0x5   :  { %v41_v9 = vmul.f32 1.442695, %v37_v4  ;;  %v43_v15 = vmul.f32 1.442695, %v38_v10  ;;  %v74_v19 = vmul.f32 0.5, %v457_v17  ;;  %v73_v22 = vmul.f32 0.5, %v456_v20 }
   0x6   :  { %531 = vpow2.f32 %v75_v6  ;;  %v45_v21 = vmul.f32 1.442695, %v39_v16  ;;  %v198_v25 = vmul.f32 0.5, %v472_v23  ;;  %v471_v26 = vld [vmem:[%s851_s4 + $0x20] sm:$0xff]  ;;  %v474_v29 = vld [vmem:[%s851_s4 + $0x38] sm:$0xff]  ;;  %v473_v32 = vld [vmem:[%s851_s4 + $0x30] sm:$0xff] }
   0x7   :  { %533 = vpow2.f32 %v41_v9  ;;  %v81_v24 = vmul.f32 1.442695, %v74_v19  ;;  %v79_v27 = vmul.f32 1.442695, %v73_v22  ;;  %v197_v28 = vmul.f32 0.5, %v471_v26  ;;  %v484_v35 = vld [vmem:[%s852_s5 + $0x28] sm:$0xff] }
   0x8   :  { %535 = vpow2.f32 %v77_v12  ;;  %v203_v30 = vmul.f32 1.442695, %v198_v25  ;;  %v200_v31 = vmul.f32 0.5, %v474_v29  ;;  %v199_v34 = vmul.f32 0.5, %v473_v32  ;;  %v458_v36 = vld [vmem:[%s849_s2 + $0x40] sm:$0xff]  ;;  %v486_v40 = vld [vmem:[%s852_s5 + $0x38] sm:$0xff] }
   0x9   :  { %537 = vpow2.f32 %v43_v15  ;;  %v201_v33 = vmul.f32 1.442695, %v197_v28  ;;  %v483_v37 = vld [vmem:[%s852_s5 + $0x20] sm:$0xff]  ;;  %v354_v39 = vmul.f32 0.5, %v484_v35  ;;  %v459_v43 = vld [vmem:[%s849_s2 + $0x48] sm:$0xff]  ;;  %v485_v46 = vld [vmem:[%s852_s5 + $0x30] sm:$0xff] }
   0xa   :  { %539 = vpow2.f32 %v47_v18  ;;  %v450_v38 = vld [vmem:[%s848_s1 + $0x40] sm:$0xff]  ;;  %v207_v44 = vmul.f32 1.442695, %v200_v31  ;;  %v353_v45 = vmul.f32 0.5, %v483_v37  ;;  %v451_v50 = vld [vmem:[%s848_s1 + $0x48] sm:$0xff]  ;;  %v453_v56 = vld [vmem:[%s848_s1 + $0x58] sm:$0xff] }
   0xb   :  { %541 = vpow2.f32 %v45_v21  ;;  %v62_v42 = vld [vmem:[%s849_s2] sm:$0xff]  ;;  %v205_v51 = vmul.f32 1.442695, %v199_v34  ;;  %v63_v54 = vld [vmem:[%s849_s2 + $0x8] sm:$0xff]  ;;  %v356_v57 = vmul.f32 0.5, %v486_v40  ;;  %v452_v61 = vld [vmem:[%s848_s1 + $0x50] sm:$0xff] }
   0xc   :  { %543 = vpow2.f32 %v81_v24  ;;  %v28_v49 = vld [vmem:[%s848_s1] sm:$0xff]  ;;  %v29_v55 = vld [vmem:[%s848_s1 + $0x8] sm:$0xff]  ;;  %v359_v62 = vmul.f32 1.442695, %v354_v39  ;;  %v355_v63 = vmul.f32 0.5, %v485_v46 }
   0xd   :  { %545 = vpow2.f32 %v79_v27 }
   0xe   :  { %547 = vpow2.f32 %v203_v30 }
   0xf   :  { %549 = vpow2.f32 %v201_v33 }
  0x10   :  { %v532_v41 = vpop.eup %531 }
  0x11   :  { %v534_v47 = vpop.eup %533  ;;  %v88_v48 = vmul.f32 %v532_v41, %v458_v36 }
  0x12   :  { %v536_v52 = vpop.eup %535  ;;  %v54_v53 = vmul.f32 %v534_v47, %v450_v38 }
  0x13   :  { %v538_v58 = vpop.eup %537  ;;  %v92_v59 = vadd.f32 %v88_v48, %v62_v42  ;;  %v89_v60 = vmul.f32 %v536_v52, %v459_v43 }
  0x14   :  { %12 = vsyncpa [#allocation3], 0  ;;  %v540_v0 = vpop.eup %539  ;;  %v58_v1 = vadd.f32 %v54_v53, %v28_v49  ;;  %v55_v2 = vmul.f32 %v538_v58, %v451_v50  ;;  %551 = vpow2.f32 %v207_v44  ;;  %v357_v3 = vmul.f32 1.442695, %v353_v45  ;;  %v31_v6 = vld [vmem:[%s848_s1 + $0x18] sm:$0xff]  ;;  %v30_v10 = vld [vmem:[%s848_s1 + $0x10] sm:$0xff] }
  0x15   :  { %v542_v4 = vpop.eup %541  ;;  %128 = vperm.xlu1 %530, %v92_v59   ;;  %v93_v5 = vadd.f32 %v89_v60, %v63_v54  ;;  %v57_v7 = vmul.f32 %v540_v0, %v453_v56  ;;  %553 = vpow2.f32 %v205_v51  ;;  %v461_v12 = vld [vmem:[%s849_s2 + $0x58] sm:$0xff]  ;;  %v363_v13 = vmul.f32 1.442695, %v356_v57  ;;  %v491_v14 = vld [vmem:[%s853_s6 + $0x1] sm:$0x1]  ;;  %v460_v16 = vld [vmem:[%s849_s2 + $0x50] sm:$0xff] }
  0x16   :  { %v544_v8 = vpop.eup %543  ;;  %98 = vperm.xlu0 %529, %v58_v1   ;;  %v59_v9 = vadd.f32 %v55_v2, %v29_v55  ;;  %v56_v11 = vmul.f32 %v542_v4, %v452_v61  ;;  %555 = vpow2.f32 %v359_v62  ;;  %v361_v17 = vmul.f32 1.442695, %v355_v63  ;;  %v463_v18 = vld [vmem:[%s850_s3 + $0x20] sm:$0xff]  ;;  %v465_v19 = vld [vmem:[%s850_s3 + $0x30] sm:$0xff]  ;;  %v65_v27 = vld [vmem:[%s849_s2 + $0x18] sm:$0xff] }
  0x17   :  { %v546_v15 = vpop.eup %545  ;;  %557 = vpow2.f32 %v357_v3  ;;  %v163_v20 = vmul.f32 0.5, %v463_v18  ;;  %v61_v21 = vadd.f32 %v57_v7, %v31_v6  ;;  %v91_v22 = vmul.f32 %v544_v8, %v461_v12  ;;  %v476_v29 = vld [vmem:[%s851_s4 + $0x48] sm:$0xff]  ;;  %v64_v32 = vld [vmem:[%s849_s2 + $0x10] sm:$0xff]  ;;  %v475_v33 = vld [vmem:[%s851_s4 + $0x40] sm:$0xff] }
  0x18   :  { %v381_v23 = vmul.f32 0.5, %v491_v14  ;;  %v165_v24 = vmul.f32 0.5, %v465_v19  ;;  %v548_v25 = vpop.eup %547  ;;  %v60_v26 = vadd.f32 %v56_v11, %v30_v10  ;;  %v90_v28 = vmul.f32 %v546_v15, %v460_v16  ;;  %v189_v40 = vld [vmem:[%s851_s4 + $0x8] sm:$0xff]  ;;  %v478_v42 = vld [vmem:[%s851_s4 + $0x58] sm:$0xff]  ;;  %v188_v44 = vld [vmem:[%s851_s4] sm:$0xff] }
  0x19   :  { %133 = vperm.xlu1 %530, %v93_v5   ;;  %559 = vpow2.f32 %v363_v13  ;;  %v167_v30 = vmul.f32 1.442695, %v163_v20  ;;  %v550_v31 = vpop.eup %549  ;;  %v95_v35 = vadd.f32 %v91_v22, %v65_v27  ;;  %v215_v36 = vmul.f32 %v548_v25, %v476_v29  ;;  %v477_v45 = vld [vmem:[%s851_s4 + $0x50] sm:$0xff]  ;;  %v191_v51 = vld [vmem:[%s851_s4 + $0x18] sm:$0xff]  ;;  %v488_v53 = vld [vmem:[%s852_s5 + $0x48] sm:$0xff] }
  0x1a   :  { %103 = vperm.xlu0 %529, %v59_v9   ;;  %561 = vpow2.f32 %v361_v17  ;;  %v171_v34 = vmul.f32 1.442695, %v165_v24  ;;  %v382_v37 = vmul.f32 1.442695, %v381_v23  ;;  %v94_v39 = vadd.f32 %v90_v28, %v64_v32  ;;  %v190_v54 = vld [vmem:[%s851_s4 + $0x10] sm:$0xff]  ;;  %v487_v55 = vld [vmem:[%s852_s5 + $0x40] sm:$0xff] }
  0x1b   :  { %563 = vpow2.f32 %v167_v30  ;;  %v214_v41 = vmul.f32 %v550_v31, %v475_v33  ;;  %v219_v47 = vadd.f32 %v215_v36, %v189_v40  ;;  %v345_v59 = vld [vmem:[%s852_s5 + $0x8] sm:$0xff]  ;;  %v490_v0 = vld [vmem:[%s852_s5 + $0x58] sm:$0xff]  ;;  %v467_v1 = vld [vmem:[%s850_s3 + $0x40] sm:$0xff]  ;;  %vm242_vm0 = vcmask 261120  }
  0x1c   :  { %565 = vpow2.f32 %v171_v34  ;;  %v469_v2 = vld [vmem:[%s850_s3 + $0x50] sm:$0xff]  ;;  %v344_v4 = vld [vmem:[%s852_s5] sm:$0xff]  ;;  %v347_v14 = vld [vmem:[%s852_s5 + $0x18] sm:$0xff] }
  0x1d   :  { %113 = vperm.xlu1 %530, %v61_v21   ;;  %567 = vpow2.f32 %v382_v37  ;;  %v218_v50 = vadd.f32 %v214_v41, %v188_v44  ;;  %v489_v5 = vld [vmem:[%s852_s5 + $0x50] sm:$0xff]  ;;  %v154_v7 = vld [vmem:[%s850_s3] sm:$0xff]  ;;  %v464_v25 = vld [vmem:[%s850_s3 + $0x28] sm:$0xff] }
  0x1e   :  { %v552_v38 = vpop.eup %551  ;;  %108 = vperm.xlu0 %529, %v60_v26   ;;  %v156_v8 = vld [vmem:[%s850_s3 + $0x10] sm:$0xff]  ;;  %v492_v19 = vld [vmem:[%s853_s6 + $0x2] sm:$0x1]  ;;  %v378_v23 = vld [vmem:[%s853_s6] sm:$0x1]  ;;  %v164_v27 = vmul.f32 0.5, %v464_v25 }
  0x1f   :  { %v554_v43 = vpop.eup %553  ;;  %v217_v48 = vmul.f32 %v552_v38, %v478_v42  ;;  %v346_v18 = vld [vmem:[%s852_s5 + $0x10] sm:$0xff]  ;;  %v466_v26 = vld [vmem:[%s850_s3 + $0x38] sm:$0xff]  ;;  %v462_v30 = vld [vmem:[%s847_s0] ss:$0 sm:$0xff] }
  0x20   :  { %v556_v46 = vpop.eup %555  ;;  %v216_v52 = vmul.f32 %v554_v43, %v477_v45  ;;  %v166_v28 = vmul.f32 0.5, %v466_v26  ;;  %v169_v29 = vmul.f32 1.442695, %v164_v27  ;;  %v426_v26 = vlaneseq }
  0x21   :  { %143 = vperm.xlu1 %530, %v95_v35   ;;  %v558_v49 = vpop.eup %557  ;;  %v221_v58 = vadd.f32 %v217_v48, %v191_v51  ;;  %v371_v60 = vmul.f32 %v556_v46, %v488_v53  ;;  %v470_v53 = vld [vmem:[%s850_s3 + $0x58] sm:$0xff] }
  0x22   :  { %138 = vperm.xlu0 %529, %v94_v39   ;;  %v220_v62 = vadd.f32 %v216_v52, %v190_v54  ;;  %v370_v63 = vmul.f32 %v558_v49, %v487_v55  ;;  %v173_v31 = vmul.f32 1.442695, %v166_v28  ;;  %569 = vpow2.f32 %v169_v29  ;;  %v468_v52 = vld [vmem:[%s850_s3 + $0x48] sm:$0xff] }
  0x23   :  { %v560_v56 = vpop.eup %559  ;;  %v375_v10 = vadd.f32 %v371_v60, %v345_v59  ;;  %v155_v59 = vld [vmem:[%s850_s3 + $0x8] sm:$0xff]  ;;  %v157_v60 = vld [vmem:[%s850_s3 + $0x18] sm:$0xff]  ;;  %v427_v29 = vshrl.u32 %v426_v26, 7  ;;  %s598_s3 = smov [#allocation2]  }
  0x24   :  { %v562_v57 = vpop.eup %561  ;;  %v373_v11 = vmul.f32 %v560_v56, %v490_v0  ;;  %v374_v13 = vadd.f32 %v370_v63, %v344_v4  ;;  %571 = vpow2.f32 %v173_v31  ;;  %s438_s27 = sshll.u32 %s598_s3, 4  ;;  %s439_s27 = int_to_ptr.vmem [resolvable:$true] %s438_s27 }
  0x25   :  { %229 = vperm.xlu1 %530, %v219_v47   ;;  %v564_v61 = vpop.eup %563  ;;  %v372_v15 = vmul.f32 %v562_v57, %v489_v5  ;;  %s573_s28 = scalar_lea.vmem %s439_s27, 16  ;;  %s577_s29 = scalar_lea.vmem %s439_s27, 32 }
  0x26   :  { %224 = vperm.xlu0 %529, %v218_v50   ;;  %v566_v3 = vpop.eup %565  ;;  %v180_v6 = vmul.f32 %v564_v61, %v467_v1  ;;  %v377_v20 = vadd.f32 %v373_v11, %v347_v14  ;;  %p574_p0 = scmp.ne.s32.totalorder %s439_s27, %s573_s28  ;;  %p578_p1 = scmp.lt.s32.totalorder %s439_s27, %s439_s27 }
  0x27   :  { %v182_v9 = vmul.f32 %v566_v3, %v469_v2  ;;  %v568_v17 = vpop.eup %567  ;;  %v376_v21 = vadd.f32 %v372_v15, %v346_v18  ;;  %p579_p2 = scmp.lt.s32.totalorder %s577_s29, %s573_s28 }
  0x28   :  { %v184_v12 = vadd.f32 %v180_v6, %v154_v7  ;;  %v386_v22 = vmul.f32 %v568_v17, %v492_v19 }
  0x29   :  { %239 = vperm.xlu1 %530, %v221_v58   ;;  %v186_v16 = vadd.f32 %v182_v9, %v156_v8  ;;  %p580_p3 = por %p579_p2, %p578_p1 }
  0x2a   :  { %234 = vperm.xlu0 %529, %v220_v62   ;;  %509 = vmatprep.mubr.msk.f32.mxu0 %vm242_vm0, %v184_v12  ;;  %v387_v24 = vadd.f32 %v386_v22, %v378_v23 }
  0x2b   :  { %512 = vmatprep.mubr.msk.f32.mxu1 %vm242_vm0, %v186_v16  ;;  %p581_p4 = pnand %p580_p3, %p574_p0 }
  0x2c   :  { %v570_v45 = vpop.eup %569 }
  0x2d   :  { %395 = vperm.xlu1 %530, %v375_v10   ;;  %v181_v57 = vmul.f32 %v570_v45, %v468_v52 }
  0x2e   :  { %390 = vperm.xlu0 %529, %v374_v13   ;;  %v572_v49 = vpop.eup %571 }
  0x2f   :  { %v183_v58 = vmul.f32 %v572_v49, %v470_v53  ;;  %v185_v62 = vadd.f32 %v181_v57, %v155_v59 }
  0x31   :  { %405 = vperm.xlu1 %530, %v377_v20   ;;  %v187_v63 = vadd.f32 %v183_v58, %v157_v60 }
  0x32   :  { %400 = vperm.xlu0 %529, %v376_v21  }
  0x36   :  { %423 = vperm.xlu0 %529, %v387_v24  }
  0x94   :  { %v129_v32 = vpop.permute.xlu1 %128 }
  0x95   :  { %v99_v33 = vpop.permute.xlu0 %98 }
  0x96   :  { %v122_v34 = vmul.f32 %v462_v30, %v99_v33 }
  0x98   :  { %v134_v35 = vpop.permute.xlu1 %133  ;;  %v146_v37 = vadd.f32 %v129_v32, %v122_v34  ;;  %v428_v32 = vsub.s32 0, %v427_v29 }
  0x99   :  { %v104_v36 = vpop.permute.xlu0 %103 }
  0x9a   :  { %v123_v38 = vmul.f32 %v462_v30, %v104_v36  ;;  %v150_v42 = vmax.f32 %v146_v37, 0.0 }
  0x9c   :  { %v147_v39 = vadd.f32 %v134_v35, %v123_v38  ;;  %v114_v40 = vpop.permute.xlu1 %113 }
  0x9d   :  { %v109_v41 = vpop.permute.xlu0 %108  ;;  %v125_v44 = vmul.f32 %v462_v30, %v114_v40 }
  0x9e   :  { %v151_v43 = vmax.f32 %v147_v39, 0.0  ;;  %v124_v47 = vmul.f32 %v462_v30, %v109_v41 }
  0xa0   :  { %v515_v46 = vpack.c.bf16 %v151_v43, %v150_v42  ;;  %v144_v48 = vpop.permute.xlu1 %143 }
  0xa1   :  { %v149_v50 = vadd.f32 %v144_v48, %v125_v44  ;;  %v139_v51 = vpop.permute.xlu0 %138 }
  0xa2   :  { %v148_v54 = vadd.f32 %v139_v51, %v124_v47  ;;  %516 = vmatprep.subr.bf16.mxu0 %v515_v46  ;;  %523 = vmatprep.subr.bf16.mxu1 %v515_v46 }
  0xa3   :  { %v153_v55 = vmax.f32 %v149_v50, 0.0  ;;  %518 = vmatpush3.bf16.msra.mxu0 %v515_v46  ;;  %525 = vmatpush3.bf16.msra.mxu1 %v515_v46 }
  0xa4   :  { %v152_v56 = vmax.f32 %v148_v54, 0.0  ;;  %v230_v1 = vpop.permute.xlu1 %229 }
  0xa5   :  { %v225_v0 = vpop.permute.xlu0 %224 }
  0xa6   :  { %v519_v61 = vpack.c.bf16 %v153_v55, %v152_v56 }
  0xa8   :  { %520 = vmatprep.subr.bf16.mxu0 %v519_v61  ;;  %524 = vmatprep.subr.bf16.mxu1 %v519_v61  ;;  %v240_v3 = vpop.permute.xlu1 %239 }
  0xa9   :  { %522 = vmatpush3.bf16.msra.mxu0 %v519_v61  ;;  %526 = vmatpush3.bf16.msra.mxu1 %v519_v61  ;;  %v235_v2 = vpop.permute.xlu0 %234 }
  0xac   :  { %510 = vmatmul.mubr.msk.f32.vlgmr.msra.gmra.mrb[0].mxu0 %vm242_vm0, %v185_v62  ;;  %513 = vmatmul.mubr.msk.f32.vlgmr.msra.gmra.mrb[0].mxu1 %vm242_vm0, %v187_v63  ;;  %v396_v13 = vpop.permute.xlu1 %395 }
  0xad   :  { %v391_v4 = vpop.permute.xlu0 %390 }
  0xb0   :  { %v406_v23 = vpop.permute.xlu1 %405 }
  0xb1   :  { %v401_v20 = vpop.permute.xlu0 %400 }
  0xb5   :  { %v424_v34 = vpop.permute.xlu0 %423 }
  0xb6   :  { %v429_v36 = vrot.slane %v424_v34, %v428_v32 }
 0x17f   :  { %v511_v5 = vpop.f32.mrb[0].mxu0  ;;  %v514_v6 = vpop.f32.mrb[0].mxu1 }
 0x180   :  { %v327_v7 = vadd.f32 %v511_v5, %v230_v1  ;;  %v321_v8 = vpop.f32.mrb[1].mxu0  ;;  %v331_v9 = vpop.f32.mrb[1].mxu1  ;;  %v337_v10 = vadd.f32 %v514_v6, %v240_v3 }
 0x181   :  { %v322_v11 = vadd.f32 %v321_v8, %v225_v0  ;;  %v332_v12 = vadd.f32 %v331_v9, %v235_v2 }
 0x182   :  { %v341_v14 = vmax.f32 %v327_v7, 0.0  ;;  %v343_v18 = vmax.f32 %v337_v10, 0.0 }
 0x183   :  { %v340_v15 = vmax.f32 %v322_v11, 0.0  ;;  %v342_v16 = vmax.f32 %v332_v12, 0.0 }
 0x184   :  { %v409_v17 = vmul.f32 %v396_v13, %v341_v14  ;;  %v411_v24 = vmul.f32 %v406_v23, %v343_v18 }
 0x185   :  { %v408_v19 = vmul.f32 %v391_v4, %v340_v15  ;;  %v410_v22 = vmul.f32 %v401_v20, %v342_v16 }
 0x187   :  { %v412_v21 = vadd.f32 %v409_v17, %v408_v19 }
 0x189   :  { %v413_v25 = vadd.f32 %v412_v21, %v410_v22 }
 0x18b   :  { %v414_v27 = vadd.f32 %v413_v25, %v411_v24 }
 0x18d   :  { %v415_v28 = vrot.slane %v414_v27, 4 }
 0x18f   :  { %v416_v30 = vadd.f32 %v415_v28, %v414_v27 }
 0x191   :  { %v417_v31 = vrot.slane %v416_v30, 2 }
 0x193   :  { %v418_v33 = vadd.f32 %v417_v31, %v416_v30 }
 0x195   :  { %v419_v35 = vrot.slane %v418_v33, 1 }
 0x197   :  { %v420_v37 = vadd.f32 %v419_v35, %v418_v33 }
 0x199   :  { %v430_v38 = vadd.f32 %v429_v36, %v420_v37 }
 0x19b   :  { %431 = vst [vmem:[#allocation2] sm:$0x1] %v430_v38 }
 0x19c   :  { %584 = shalt.err (!%p581_p4)
}
 0x19d   :  { %s585_s8 = scalar_lea.hbm %s854_s7, 16 }
 0x19e   :  { %p586_p5 = scmp.ne.s32.totalorder %s854_s7, %s585_s8  ;;  %p589_p6 = scmp.lt.u32.totalorder %s585_s8, %s854_s7 }
 0x1a0   :  { %p591_p7 = pnand %p589_p6, %p586_p5 }
 0x1a2   :  { %594 = shalt.err (!%p591_p7)
}
 0x1a3   :  { %441 = dma.vmem_to_hbm [thread:$0]  %s439_s27, 16, %s854_s7, [#allocation3]  }
 0x1a4   :  { %595 = dma.done.wait [#allocation3], 16  }
 0x1a5   :  { %596 = vsyncadd [#allocation3], 4294967280 }
 0x1a6   :  { %445 = vsyncpa [#allocation3], 1 }

</bundles_post_ra>
